<compile_context>
chip_gen: v5e
topology: v5e:2x2
jax: 0.10.0
libtpu: 0.0.40
codegen_flags: <defaults>
</compile_context>

<pallas_src>
import functools
import math

import jax
import jax.numpy as jnp
from jax.experimental import pallas as pl
from jax.experimental.pallas import tpu as pltpu

# ---------------- small (but TPU-lane-friendly) synthetic config -------------
BATCH = 2
SEQ = 64
HIDDEN = 256
NUM_HEADS = 2
NUM_KV_HEADS = 1
HEAD_DIM = HIDDEN // NUM_HEADS          # 128 (lane-dense)
FFN_DIM = 256
NUM_EXPERTS = 4
TOP_K = 2
RMS_EPS = 1e-5
ROUTER_JITTER = 0.01
ROPE_BASE = 10000.0

ACT_DTYPE = jnp.bfloat16                # MXU operand dtype (accumulate in f32)

# Preferred tile sizes; shrunk automatically to the actual dims. At production
# sizes re-derive per generation (v7x: 64 MiB VMEM; v5e/v6e: 128 MiB).
TILE_M = 128
TILE_N = 256
TILE_K = 256
VMEM_LIMIT = 32 * 1024 * 1024           # safe default across v5e/v6e/v7x


def _pick_tile(dim, preferred):
    """Largest tile <= preferred that evenly divides dim (or dim itself)."""
    if dim <= preferred:
        return dim
    t = preferred
    while dim % t:
        t //= 2
    return max(t, 1)


# ---------------- Pallas kernels ----------------
def _add_layernorm_kernel(x_ref, res_ref, w_ref, b_ref, out_ref, resout_ref, *, eps):
    x = x_ref[...].astype(jnp.float32) + res_ref[...].astype(jnp.float32)
    mean = jnp.mean(x, axis=-1, keepdims=True)
    var = jnp.mean(jnp.square(x - mean), axis=-1, keepdims=True)
    normed = (x - mean) * jax.lax.rsqrt(var + eps)
    out_ref[...] = (normed * w_ref[...].astype(jnp.float32)
                    + b_ref[...].astype(jnp.float32)).astype(out_ref.dtype)
    resout_ref[...] = x.astype(resout_ref.dtype)


def layernorm_add(x, residual, weight, bias, eps=RMS_EPS):
    """Returns (LayerNorm(x + residual), x + residual), tiled over tokens."""
    T, H = x.shape
    tm = _pick_tile(T, TILE_M)
    return pl.pallas_call(
        functools.partial(_add_layernorm_kernel, eps=eps),
        grid=(T // tm,),
        in_specs=[
            pl.BlockSpec((tm, H), lambda i: (i, 0)),
            pl.BlockSpec((tm, H), lambda i: (i, 0)),
            pl.BlockSpec((1, H), lambda i: (0, 0)),
            pl.BlockSpec((1, H), lambda i: (0, 0)),
        ],
        out_specs=[
            pl.BlockSpec((tm, H), lambda i: (i, 0)),
            pl.BlockSpec((tm, H), lambda i: (i, 0)),
        ],
        out_shape=[
            jax.ShapeDtypeStruct((T, H), x.dtype),
            jax.ShapeDtypeStruct((T, H), x.dtype),
        ],
        compiler_params=pltpu.CompilerParams(
            dimension_semantics=("parallel",),
            vmem_limit_bytes=VMEM_LIMIT),
    )(x, residual, weight, bias)


def _matmul_bias_kernel(x_ref, w_ref, b_ref, o_ref, acc_ref):
    k = pl.program_id(2)

    @pl.when(k == 0)
    def _():
        acc_ref[...] = jnp.zeros_like(acc_ref)

    acc_ref[...] += jnp.dot(x_ref[...], w_ref[...],
                            preferred_element_type=jnp.float32)

    @pl.when(k == pl.num_programs(2) - 1)
    def _():
        o_ref[...] = (acc_ref[...]
                      + b_ref[...].astype(jnp.float32)).astype(o_ref.dtype)


def matmul_bias(x, w, b, out_dtype=None):
    """out = x @ w + b, tiled (M, N, K), f32 accumulator, K-reduction last."""
    M, K = x.shape
    _, N = w.shape
    out_dtype = out_dtype or x.dtype
    tm = _pick_tile(M, TILE_M)
    tn = _pick_tile(N, TILE_N)
    tk = _pick_tile(K, TILE_K)
    return pl.pallas_call(
        _matmul_bias_kernel,
        grid=(M // tm, N // tn, K // tk),
        in_specs=[
            pl.BlockSpec((tm, tk), lambda i, j, k: (i, k)),
            pl.BlockSpec((tk, tn), lambda i, j, k: (k, j)),
            pl.BlockSpec((1, tn), lambda i, j, k: (0, j)),
        ],
        out_specs=pl.BlockSpec((tm, tn), lambda i, j, k: (i, j)),
        out_shape=jax.ShapeDtypeStruct((M, N), out_dtype),
        scratch_shapes=[pltpu.VMEM((tm, tn), jnp.float32)],
        compiler_params=pltpu.CompilerParams(
            dimension_semantics=("parallel", "parallel", "arbitrary"),
            vmem_limit_bytes=VMEM_LIMIT),
    )(x, w, b)


def _attn_kernel(q_ref, k_ref, v_ref, o_ref, *, scale):
    group, S, D = q_ref.shape[1], q_ref.shape[2], q_ref.shape[3]
    q = q_ref[0].reshape(group * S, D)            # fold GQA group into rows
    k = k_ref[0, 0]                               # (S, D)
    v = v_ref[0, 0]                               # (S, D)
    # Contract D directly (no explicit transpose of K).
    s = jax.lax.dot_general(q, k, (((1,), (1,)), ((), ())),
                            preferred_element_type=jnp.float32) * scale
    qpos = jax.lax.broadcasted_iota(jnp.int32, s.shape, 0) % S
    kpos = jax.lax.broadcasted_iota(jnp.int32, s.shape, 1)
    s = jnp.where(kpos <= qpos, s, -jnp.inf)      # causal mask
    m = jnp.max(s, axis=-1, keepdims=True)
    e = jnp.exp(s - m)
    p = e * pl.reciprocal(jnp.sum(e, axis=-1, keepdims=True), approx=True)
    out = jnp.dot(p.astype(v.dtype), v, preferred_element_type=jnp.float32)
    o_ref[0] = out.reshape(group, S, D).astype(o_ref.dtype)


def attention(q, k, v):
    # q: [B, nH, S, D]; k, v: [B, nKV, S, D]. One grid step per (batch, kv
    # head): K/V are DMA'd once and serve all `group` query heads.
    B, nH, S, D = q.shape
    nKV = k.shape[1]
    group = nH // nKV
    scale = 1.0 / math.sqrt(D)
    return pl.pallas_call(
        functools.partial(_attn_kernel, scale=scale),
        grid=(B, nKV),
        in_specs=[
            pl.BlockSpec((1, group, S, D), lambda b, h: (b, h, 0, 0)),
            pl.BlockSpec((1, 1, S, D), lambda b, h: (b, h, 0, 0)),
            pl.BlockSpec((1, 1, S, D), lambda b, h: (b, h, 0, 0)),
        ],
        out_specs=pl.BlockSpec((1, group, S, D), lambda b, h: (b, h, 0, 0)),
        out_shape=jax.ShapeDtypeStruct((B, nH, S, D), q.dtype),
        compiler_params=pltpu.CompilerParams(
            dimension_semantics=("parallel", "parallel"),
            vmem_limit_bytes=VMEM_LIMIT),
    )(q, k, v)


def _moe_kernel(x_ref, wg_ref, wu_ref, wd_ref, ew_ref, o_ref, acc_ref):
    e = pl.program_id(1)

    @pl.when(e == 0)
    def _():
        acc_ref[...] = jnp.zeros_like(acc_ref)

    x = x_ref[...]                                                    # (tm, H)
    gate = jnp.dot(x, wg_ref[0], preferred_element_type=jnp.float32)  # (tm, F)
    up = jnp.dot(x, wu_ref[0], preferred_element_type=jnp.float32)    # (tm, F)
    act = (gate * jax.nn.sigmoid(gate)) * up                          # SiLU * up, f32
    act = (act * ew_ref[0].astype(jnp.float32)).astype(x.dtype)       # routing weight
    acc_ref[...] += jnp.dot(act, wd_ref[0], preferred_element_type=jnp.float32)

    @pl.when(e == pl.num_programs(1) - 1)
    def _():
        o_ref[...] = acc_ref[...].astype(o_ref.dtype)


def moe_experts(x, w_gate, w_up, w_down, expert_weights):
    # x: [T, H]; w_gate/w_up: [E, H, F]; w_down: [E, F, H];
    # expert_weights: [E, T, 1] (exactly 0 for unselected experts).
    T, H = x.shape
    E, _, F = w_gate.shape
    tm = _pick_tile(T, TILE_M)
    return pl.pallas_call(
        _moe_kernel,
        grid=(T // tm, E),
        in_specs=[
            pl.BlockSpec((tm, H), lambda i, e: (i, 0)),
            pl.BlockSpec((1, H, F), lambda i, e: (e, 0, 0)),
            pl.BlockSpec((1, H, F), lambda i, e: (e, 0, 0)),
            pl.BlockSpec((1, F, H), lambda i, e: (e, 0, 0)),
            pl.BlockSpec((1, tm, 1), lambda i, e: (e, i, 0)),
        ],
        out_specs=pl.BlockSpec((tm, H), lambda i, e: (i, 0)),
        out_shape=jax.ShapeDtypeStruct((T, H), x.dtype),
        scratch_shapes=[pltpu.VMEM((tm, H), jnp.float32)],
        compiler_params=pltpu.CompilerParams(
            dimension_semantics=("parallel", "arbitrary"),
            vmem_limit_bytes=VMEM_LIMIT),
    )(x, w_gate, w_up, w_down, expert_weights)


# ---------------- JAX glue ----------------
def make_rotary(seq, dim, base=ROPE_BASE):
    inv_freq = 1.0 / (base ** (jnp.arange(0, dim, 2, dtype=jnp.float32) / dim))
    t = jnp.arange(seq, dtype=jnp.float32)
    freqs = jnp.outer(t, inv_freq)                      # [S, dim/2]
    emb = jnp.concatenate([freqs, freqs], axis=-1)      # [S, dim]
    return jnp.cos(emb), jnp.sin(emb)


def _rotate_half(x):
    d = x.shape[-1] // 2
    return jnp.concatenate([-x[..., d:], x[..., :d]], axis=-1)


def apply_rotary(q, k, cos, sin):
    # q: [T, nH, D], k: [T, nKV, D], cos/sin: [T, D]; math in f32.
    cos = cos[:, None, :]
    sin = sin[:, None, :]
    qf = q.astype(jnp.float32)
    kf = k.astype(jnp.float32)
    q_out = qf * cos + _rotate_half(qf) * sin
    k_out = kf * cos + _rotate_half(kf) * sin
    return q_out.astype(q.dtype), k_out.astype(k.dtype)


def sparsemixer(scores, jitter_eps):
    """JAX translation of the reference sparsemixer (top_k == 2, no grad)."""
    # ---- top-1 ----
    max_val = jnp.max(scores, axis=-1, keepdims=True)
    max_ind = jnp.argmax(scores, axis=-1, keepdims=True)
    factor = jnp.maximum(jnp.abs(scores), max_val)            # clamp(min=max)
    mask = ((max_val - scores) / factor) > (2.0 * jitter_eps)
    masked_gates = jnp.where(mask, -jnp.inf, scores)
    masked_gates = jax.nn.softmax(masked_gates, axis=-1)
    mult1 = jnp.take_along_axis(masked_gates, max_ind, axis=-1)

    # ---- mask out top-1, pick top-2 (factor from unmasked scores, mask
    #      applied onto masked_scores — matches the PyTorch reference) ----
    one_hot1 = jax.nn.one_hot(max_ind[..., 0], scores.shape[-1], dtype=bool)
    masked_scores = jnp.where(one_hot1, -jnp.inf, scores)
    max_val2 = jnp.max(masked_scores, axis=-1, keepdims=True)
    max_ind2 = jnp.argmax(masked_scores, axis=-1, keepdims=True)
    factor2 = jnp.maximum(jnp.abs(scores), max_val2)
    mask2 = ((max_val2 - scores) / factor2) > (2.0 * jitter_eps)
    masked_gates2 = jnp.where(mask2, -jnp.inf, masked_scores)
    masked_gates2 = jax.nn.softmax(masked_gates2, axis=-1)
    mult2 = jnp.take_along_axis(masked_gates2, max_ind2, axis=-1)

    multiplier = jnp.concatenate([mult1, mult2], axis=-1)       # [T, 2]
    selected = jnp.concatenate([max_ind, max_ind2], axis=-1)    # [T, 2]
    return multiplier, selected


def phimoe_decoder_layer(params, hidden_states, rotary_pos_emb, residual=None):
    """Returns (moe_out, residual) in the lmdeploy deferred-residual convention
    (the next layer's input_layernorm fuses the residual add), matching the
    PyTorch PhiMoEDecoderLayer."""
    B, S, H = hidden_states.shape
    T = B * S
    x = hidden_states.reshape(T, H)
    res_in = jnp.zeros_like(x) if residual is None else residual.reshape(T, H)

    # input layernorm (fused residual add; residual=None handled with zeros)
    normed, residual_flat = layernorm_add(x, res_in, params["ln1_w"], params["ln1_b"])

    # ---- self attention ----
    qkv = matmul_bias(normed, params["w_qkv"], params["b_qkv"])
    q_sz = NUM_HEADS * HEAD_DIM
    kv_sz = NUM_KV_HEADS * HEAD_DIM
    q = qkv[:, :q_sz].reshape(T, NUM_HEADS, HEAD_DIM)
    k = qkv[:, q_sz:q_sz + kv_sz].reshape(T, NUM_KV_HEADS, HEAD_DIM)
    v = qkv[:, q_sz + kv_sz:].reshape(T, NUM_KV_HEADS, HEAD_DIM)

    cos, sin = rotary_pos_emb
    q, k = apply_rotary(q, k, cos, sin)

    q = q.reshape(B, S, NUM_HEADS, HEAD_DIM).transpose(0, 2, 1, 3)
    k = k.reshape(B, S, NUM_KV_HEADS, HEAD_DIM).transpose(0, 2, 1, 3)
    v = v.reshape(B, S, NUM_KV_HEADS, HEAD_DIM).transpose(0, 2, 1, 3)

    attn = attention(q, k, v)                                   # [B, nH, S, D]
    attn = attn.transpose(0, 2, 1, 3).reshape(T, NUM_HEADS * HEAD_DIM)
    attn = matmul_bias(attn, params["w_o"], params["b_o"])

    # post attention layernorm (fused residual add)
    hidden, residual_flat = layernorm_add(
        attn, residual_flat, params["ln2_w"], params["ln2_b"])

    # ---- sparse MoE block ----
    # Router gate weight is zero-padded to a lane-dense output (N=128); slice
    # back to the real expert count in JAX. Logits kept in f32 for routing.
    router_logits = matmul_bias(hidden, params["w_gate"], params["b_gate"],
                                out_dtype=jnp.float32)[:, :NUM_EXPERTS]
    topk_w, topk_i = sparsemixer(router_logits, jitter_eps=ROUTER_JITTER)
    # dense [T, E] expert weights (renormalize=False; exact 0 for unselected)
    ew = jnp.sum(
        topk_w[..., None] * jax.nn.one_hot(topk_i, NUM_EXPERTS, dtype=jnp.float32),
        axis=1)
    ew = jnp.transpose(ew)[:, :, None]                          # [E, T, 1] f32
    out = moe_experts(hidden, params["w_moe_gate"], params["w_moe_up"],
                      params["w_moe_down"], ew)

    return out.reshape(B, S, H), residual_flat.reshape(B, S, H)


def init_params(key):
    ks = jax.random.split(key, 12)
    scale = 0.05
    qkv_out = (NUM_HEADS + 2 * NUM_KV_HEADS) * HEAD_DIM
    gate_pad = max(128, ((NUM_EXPERTS + 127) // 128) * 128)
    w_gate = scale * jax.random.normal(ks[4], (HIDDEN, NUM_EXPERTS), jnp.float32)
    w_gate_pad = jnp.zeros((HIDDEN, gate_pad), jnp.float32).at[:, :NUM_EXPERTS].set(w_gate)
    return dict(
        # layernorm params stay f32
        ln1_w=(jnp.ones((1, HIDDEN), jnp.float32)
               + 0.01 * jax.random.normal(ks[7], (1, HIDDEN), jnp.float32)),
        ln1_b=0.01 * jax.random.normal(ks[8], (1, HIDDEN), jnp.float32),
        ln2_w=jnp.ones((1, HIDDEN), jnp.float32),
        ln2_b=jnp.zeros((1, HIDDEN), jnp.float32),
        # MXU weights in bf16 (accumulation is f32 in-kernel)
        w_qkv=(scale * jax.random.normal(ks[0], (HIDDEN, qkv_out), jnp.float32)).astype(ACT_DTYPE),
        b_qkv=scale * jax.random.normal(ks[1], (1, qkv_out), jnp.float32),
        w_o=(scale * jax.random.normal(ks[2], (NUM_HEADS * HEAD_DIM, HIDDEN), jnp.float32)).astype(ACT_DTYPE),
        b_o=scale * jax.random.normal(ks[3], (1, HIDDEN), jnp.float32),
        w_gate=w_gate_pad.astype(ACT_DTYPE),
        b_gate=jnp.zeros((1, gate_pad), jnp.float32),
        w_moe_gate=(scale * jax.random.normal(ks[5], (NUM_EXPERTS, HIDDEN, FFN_DIM), jnp.float32)).astype(ACT_DTYPE),
        w_moe_up=(scale * jax.random.normal(ks[9], (NUM_EXPERTS, HIDDEN, FFN_DIM), jnp.float32)).astype(ACT_DTYPE),
        w_moe_down=(scale * jax.random.normal(ks[6], (NUM_EXPERTS, FFN_DIM, HIDDEN), jnp.float32)).astype(ACT_DTYPE),
    )


if __name__ == "__main__":
    key = jax.random.PRNGKey(0)
    pkey, xkey = jax.random.split(key)
    params = init_params(pkey)

    hidden_states = jax.random.normal(
        xkey, (BATCH, SEQ, HIDDEN), jnp.float32).astype(ACT_DTYPE)

    cos, sin = make_rotary(SEQ, HEAD_DIM)
    # per-token (batch*seq flattened) rotary tables
    cos = jnp.tile(cos, (BATCH, 1))
    sin = jnp.tile(sin, (BATCH, 1))

    out, residual = phimoe_decoder_layer(
        params, hidden_states, (cos, sin), residual=None)
    jax.block_until_ready((out, residual))
    assert out.shape == (BATCH, SEQ, HIDDEN)
    assert residual.shape == (BATCH, SEQ, HIDDEN)
    assert jnp.isfinite(out.astype(jnp.float32)).all()
    print("KERNEL_OK")
</pallas_src>

<mosaic_0001>
module attributes {stable_mosaic.version = 11 : i64} {
  func.func @_add_layernorm_kernel(%arg0: i32, %arg1: memref<128x256xbf16, #tpu.memory_space<vmem>>, %arg2: memref<128x256xbf16, #tpu.memory_space<vmem>>, %arg3: memref<1x256xf32, #tpu.memory_space<vmem>>, %arg4: memref<1x256xf32, #tpu.memory_space<vmem>>, %arg5: memref<128x256xbf16, #tpu.memory_space<vmem>>, %arg6: memref<128x256xbf16, #tpu.memory_space<vmem>>) attributes {dimension_semantics = [#tpu.dimension_semantics<parallel>], iteration_bounds = array<i64: 1>, scalar_prefetch = 0 : i64, scratch_operands = 0 : i64, tpu.core_type = #tpu.core_type<tc>, window_params = [{transform_indices = @transform_0, window_bounds = array<i64: 128, 256>}, {transform_indices = @transform_1, window_bounds = array<i64: 128, 256>}, {pipeline_mode = #tpu.pipeline_mode<synchronous>, transform_indices = @transform_2, window_bounds = array<i64: 1, 256>}, {pipeline_mode = #tpu.pipeline_mode<synchronous>, transform_indices = @transform_3, window_bounds = array<i64: 1, 256>}, {transform_indices = @transform_4, window_bounds = array<i64: 128, 256>}, {transform_indices = @transform_5, window_bounds = array<i64: 128, 256>}]} {
    %c0 = arith.constant 0 : index
    %c0_0 = arith.constant 0 : index
    %0 = vector.load %arg1[%c0, %c0_0] : memref<128x256xbf16, #tpu.memory_space<vmem>>, vector<128x256xbf16>
    %1 = arith.extf %0 : vector<128x256xbf16> to vector<128x256xf32>
    %c0_1 = arith.constant 0 : index
    %c0_2 = arith.constant 0 : index
    %2 = vector.load %arg2[%c0_1, %c0_2] : memref<128x256xbf16, #tpu.memory_space<vmem>>, vector<128x256xbf16>
    %3 = arith.extf %2 : vector<128x256xbf16> to vector<128x256xf32>
    %4 = arith.addf %1, %3 : vector<128x256xf32>
    %cst = arith.constant dense<0.000000e+00> : vector<128xf32>
    %5 = vector.multi_reduction <add>, %4, %cst [1] : vector<128x256xf32> to vector<128xf32>
    %6 = vector.shape_cast %5 : vector<128xf32> to vector<128x1xf32>
    %cst_3 = arith.constant 2.560000e+02 : f32
    %7 = vector.broadcast %cst_3 : f32 to vector<128x1xf32>
    %8 = arith.divf %6, %7 : vector<128x1xf32>
    %9 = vector.broadcast %8 : vector<128x1xf32> to vector<128x256xf32>
    %10 = arith.subf %4, %9 : vector<128x256xf32>
    %11 = arith.mulf %10, %10 : vector<128x256xf32>
    %cst_4 = arith.constant dense<0.000000e+00> : vector<128xf32>
    %12 = vector.multi_reduction <add>, %11, %cst_4 [1] : vector<128x256xf32> to vector<128xf32>
    %13 = vector.shape_cast %12 : vector<128xf32> to vector<128x1xf32>
    %cst_5 = arith.constant 2.560000e+02 : f32
    %14 = vector.broadcast %cst_5 : f32 to vector<128x1xf32>
    %15 = arith.divf %13, %14 : vector<128x1xf32>
    %16 = vector.broadcast %8 : vector<128x1xf32> to vector<128x256xf32>
    %17 = arith.subf %4, %16 : vector<128x256xf32>
    %cst_6 = arith.constant 9.99999974E-6 : f32
    %18 = vector.broadcast %cst_6 : f32 to vector<128x1xf32>
    %19 = arith.addf %15, %18 : vector<128x1xf32>
    %20 = math.rsqrt %19 : vector<128x1xf32>
    %21 = vector.broadcast %20 : vector<128x1xf32> to vector<128x256xf32>
    %22 = arith.mulf %17, %21 : vector<128x256xf32>
    %c0_7 = arith.constant 0 : index
    %c0_8 = arith.constant 0 : index
    %23 = vector.load %arg3[%c0_7, %c0_8] : memref<1x256xf32, #tpu.memory_space<vmem>>, vector<1x256xf32>
    %24 = vector.broadcast %23 : vector<1x256xf32> to vector<128x256xf32>
    %25 = arith.mulf %22, %24 : vector<128x256xf32>
    %c0_9 = arith.constant 0 : index
    %c0_10 = arith.constant 0 : index
    %26 = vector.load %arg4[%c0_9, %c0_10] : memref<1x256xf32, #tpu.memory_space<vmem>>, vector<1x256xf32>
    %27 = vector.broadcast %26 : vector<1x256xf32> to vector<128x256xf32>
    %28 = arith.addf %25, %27 : vector<128x256xf32>
    %29 = arith.truncf %28 : vector<128x256xf32> to vector<128x256xbf16>
    %c0_11 = arith.constant 0 : index
    %c0_12 = arith.constant 0 : index
    %30 = vector.load %arg5[%c0_11, %c0_12] : memref<128x256xbf16, #tpu.memory_space<vmem>>, vector<128x256xbf16>
    tpu.vector_store %arg5[%c0_11, %c0_12], %29 {strides = array<i32>} : memref<128x256xbf16, #tpu.memory_space<vmem>>, vector<128x256xbf16>,
    %31 = arith.truncf %4 : vector<128x256xf32> to vector<128x256xbf16>
    %c0_13 = arith.constant 0 : index
    %c0_14 = arith.constant 0 : index
    %32 = vector.load %arg6[%c0_13, %c0_14] : memref<128x256xbf16, #tpu.memory_space<vmem>>, vector<128x256xbf16>
    tpu.vector_store %arg6[%c0_13, %c0_14], %31 {strides = array<i32>} : memref<128x256xbf16, #tpu.memory_space<vmem>>, vector<128x256xbf16>,
    return
  }
  func.func @transform_0(%arg0: i32) -> (i32, i32) {
    %c0_i32 = arith.constant 0 : i32
    %c0_i32_0 = arith.constant 0 : i32
    return %arg0, %c0_i32 : i32, i32
  }
  func.func @transform_1(%arg0: i32) -> (i32, i32) {
    %c0_i32 = arith.constant 0 : i32
    %c0_i32_0 = arith.constant 0 : i32
    return %arg0, %c0_i32 : i32, i32
  }
  func.func @transform_2(%arg0: i32) -> (i32, i32) {
    %c0_i32 = arith.constant 0 : i32
    %c0_i32_0 = arith.constant 0 : i32
    %c0_i32_1 = arith.constant 0 : i32
    return %c0_i32, %c0_i32_0 : i32, i32
  }
  func.func @transform_3(%arg0: i32) -> (i32, i32) {
    %c0_i32 = arith.constant 0 : i32
    %c0_i32_0 = arith.constant 0 : i32
    %c0_i32_1 = arith.constant 0 : i32
    return %c0_i32, %c0_i32_0 : i32, i32
  }
  func.func @transform_4(%arg0: i32) -> (i32, i32) {
    %c0_i32 = arith.constant 0 : i32
    %c0_i32_0 = arith.constant 0 : i32
    return %arg0, %c0_i32 : i32, i32
  }
  func.func @transform_5(%arg0: i32) -> (i32, i32) {
    %c0_i32 = arith.constant 0 : i32
    %c0_i32_0 = arith.constant 0 : i32
    return %arg0, %c0_i32 : i32, i32
  }
}

</mosaic_0001>

<bundles_post_ra>
// kernel: tpu_custom_call.1
= control target key start
LH: loop header
LB: loop body
LE: loop exit
PB: predicated region body
PF: predicated region fallthrough
CT: control target
= control target key end

     0   :  { %11 = vsyncpa [#allocation3], 0  ;;  %s1607_s0 = inlined_call_operand.hbm [shape: bf16[128,256], index: 0, kind: input, shape index: {}]   ;;  %s1608_s1 = inlined_call_operand.hbm [shape: bf16[128,256], index: 1, kind: input, shape index: {}]   ;;  %s1609_s2 = inlined_call_operand.hbm [shape: f32[1,256], index: 2, kind: input, shape index: {}]   ;;  %s1610_s3 = inlined_call_operand.vmem [shape: f32[1,256], index: 3, kind: input, shape index: {}]   ;;  %s1611_s4 = inlined_call_operand.hbm [shape: bf16[128,256], index: 4, kind: output, shape index: {0}]   ;;  %s1612_s5 = inlined_call_operand.hbm [shape: bf16[128,256], index: 5, kind: output, shape index: {1}]  }
   0x1   :  { %12 = vsyncpa [#allocation6], 0 }
   0x2   :  { %13 = vsyncpa [#allocation4], 0 }
   0x3   :  { %14 = vsyncpa [#allocation10], 0  ;;  %s32_s20 = sshll.u32 %s1608_s1, 4  ;;  %s949_s21 = smov [#allocation5]   ;;  %s33_s20 = int_to_ptr.hbm [resolvable:$true] %s32_s20 }
   0x4   :  { %s34_s22 = sshll.u32 %s949_s21, 4  ;;  %s19_s25 = sshll.u32 %s1607_s0, 4  ;;  %s35_s22 = int_to_ptr.vmem [resolvable:$true] %s34_s22  ;;  %s20_s25 = int_to_ptr.hbm [resolvable:$true] %s19_s25 }
   0x5   :  { %s950_s26 = smov 128   ;;  %s951_s27 = smov 8  }
   0x6   :  { %40 = dma.hbm_to_vmem [thread:$0]  %s33_s20, 2048, %s35_s22, [#allocation6], %s950_s26, %s950_s26, %s951_s27  }
   0x7   :  { %s952_s28 = smov [#allocation2]   ;;  %s46_s1 = sshll.u32 %s1609_s2, 4  ;;  %s47_s1 = int_to_ptr.hbm [resolvable:$true] %s46_s1 }
   0x8   :  { %s21_s29 = sshll.u32 %s952_s28, 4  ;;  %s953_s0 = smov [#allocation7]   ;;  %s22_s29 = int_to_ptr.vmem [resolvable:$true] %s21_s29 }
   0x9   :  { %27 = dma.hbm_to_vmem [thread:$0]  %s20_s25, 2048, %s22_s29, [#allocation3], %s950_s26, %s950_s26, %s951_s27  }
   0xa   :  { %s48_s7 = sshll.u32 %s953_s0, 4  ;;  %s49_s7 = int_to_ptr.vmem [resolvable:$true] %s48_s7 }
   0xb   :  { %51 = dma.hbm_to_vmem [thread:$0]  %s47_s1, 32, %s49_s7, [#allocation6]  }
   0xc   :  { %941 = dma.done.wait [#allocation3], 2048  }
   0xd   :  { %942 = vsyncadd [#allocation3], 4294965248 }
   0xe   :  { %943 = dma.done.wait [#allocation6], 2080  }
   0xf   :  { %944 = vsyncadd [#allocation6], 4294965216  ;;  %v70_v0 = vld [vmem:[#allocation2 + $0x20] sm:$0xff]  ;;  %v68_v2 = vld [vmem:[#allocation2 + $0x10] sm:$0xff]  ;;  %s955_s2 = smov [#allocation9]   ;;  %s760_s11 = sshll.u32 %s1612_s5, 4  ;;  %s761_s11 = int_to_ptr.hbm [resolvable:$true] %s760_s11 }
  0x10   :  { %v118_v1 = vld [vmem:[#allocation5 + $0x20] sm:$0xff]  ;;  %v90_v3 = vunpack.c.l.bf16 %v70_v0  ;;  %v91_v4 = vunpack.c.h.bf16 %v70_v0  ;;  %v116_v7 = vld [vmem:[#allocation5 + $0x10] sm:$0xff]  ;;  %v86_v10 = vunpack.c.l.bf16 %v68_v2  ;;  %v87_v11 = vunpack.c.h.bf16 %v68_v2  ;;  %v71_v14 = vld [vmem:[#allocation2 + $0x28] sm:$0xff]  ;;  %s758_s8 = sshll.u32 %s955_s2, 4  ;;  %s747_s16 = sshll.u32 %s1611_s4, 4  ;;  %s759_s8 = int_to_ptr.vmem [resolvable:$true] %s758_s8  ;;  %s748_s16 = int_to_ptr.hbm [resolvable:$true] %s747_s16 }
  0x11   :  { %v138_v5 = vunpack.c.l.bf16 %v118_v1  ;;  %v139_v6 = vunpack.c.h.bf16 %v118_v1  ;;  %v66_v8 = vld [vmem:[#allocation2] sm:$0xff]  ;;  %v134_v12 = vunpack.c.l.bf16 %v116_v7  ;;  %v135_v13 = vunpack.c.h.bf16 %v116_v7  ;;  %v119_v23 = vld [vmem:[#allocation5 + $0x28] sm:$0xff]  ;;  %v69_v24 = vld [vmem:[#allocation2 + $0x18] sm:$0xff] }
  0x12   :  { %v114_v9 = vld [vmem:[#allocation5] sm:$0xff]  ;;  %v82_v17 = vunpack.c.l.bf16 %v66_v8  ;;  %v83_v18 = vunpack.c.h.bf16 %v66_v8  ;;  %v92_v27 = vunpack.c.l.bf16 %v71_v14  ;;  %v93_v28 = vunpack.c.h.bf16 %v71_v14  ;;  %v117_v29 = vld [vmem:[#allocation5 + $0x18] sm:$0xff]  ;;  %v67_v34 = vld [vmem:[#allocation2 + $0x8] sm:$0xff] }
  0x13   :  { %v1002_v15 = vadd.f32 %v138_v5, %v90_v3  ;;  %v1004_v16 = vadd.f32 %v139_v6, %v91_v4  ;;  %v1006_v19 = vadd.f32 %v134_v12, %v86_v10  ;;  %v1008_v20 = vadd.f32 %v135_v13, %v87_v11  ;;  %v115_v39 = vld [vmem:[#allocation5 + $0x8] sm:$0xff]  ;;  %v74_v44 = vld [vmem:[#allocation2 + $0x40] sm:$0xff]  ;;  %v72_v54 = vld [vmem:[#allocation2 + $0x30] sm:$0xff] }
  0x14   :  { %v130_v21 = vunpack.c.l.bf16 %v114_v9  ;;  %v131_v22 = vunpack.c.h.bf16 %v114_v9  ;;  %v140_v35 = vunpack.c.l.bf16 %v119_v23  ;;  %v141_v36 = vunpack.c.h.bf16 %v119_v23  ;;  %v122_v53 = vld [vmem:[#allocation5 + $0x40] sm:$0xff]  ;;  %v120_v59 = vld [vmem:[#allocation5 + $0x30] sm:$0xff]  ;;  %v77_v0 = vld [vmem:[#allocation2 + $0x58] sm:$0xff] }
  0x15   :  { %v206_v25 = vadd.f32 %v1004_v16, %v1002_v15  ;;  %v713_v26 = vpack.c.bf16 %v1004_v16, %v1002_v15  ;;  %v200_v30 = vadd.f32 %v1008_v20, %v1006_v19  ;;  %v711_v31 = vpack.c.bf16 %v1008_v20, %v1006_v19  ;;  %v125_v5 = vld [vmem:[#allocation5 + $0x58] sm:$0xff] }
  0x16   :  { %v1018_v32 = vadd.f32 %v130_v21, %v82_v17  ;;  %v1020_v33 = vadd.f32 %v131_v22, %v83_v18  ;;  %v88_v37 = vunpack.c.l.bf16 %v69_v24  ;;  %v89_v38 = vunpack.c.h.bf16 %v69_v24  ;;  %v73_v10 = vld [vmem:[#allocation2 + $0x38] sm:$0xff]  ;;  %v75_v24 = vld [vmem:[#allocation2 + $0x48] sm:$0xff] }
  0x17   :  { %729 = vst [vmem:[#allocation9 + $0x20] sm:$0xff] %v713_v26  ;;  %207 = vadd.xlane.f32.xlu2 %v206_v25  ;;  %201 = vadd.xlane.f32.xlu1 %v200_v30  ;;  %v136_v42 = vunpack.c.l.bf16 %v117_v29  ;;  %v137_v43 = vunpack.c.h.bf16 %v117_v29  ;;  %v1026_v45 = vadd.f32 %v140_v35, %v92_v27  ;;  %v1028_v46 = vadd.f32 %v141_v36, %v93_v28  ;;  %v121_v23 = vld [vmem:[#allocation5 + $0x38] sm:$0xff]  ;;  %v123_v28 = vld [vmem:[#allocation5 + $0x48] sm:$0xff]  ;;  %v80_v35 = vld [vmem:[#allocation2 + $0x70] sm:$0xff] }
  0x18   :  { %727 = vst [vmem:[#allocation9 + $0x10] sm:$0xff] %v711_v31  ;;  %v194_v40 = vadd.f32 %v1020_v33, %v1018_v32  ;;  %v709_v41 = vpack.c.bf16 %v1020_v33, %v1018_v32  ;;  %v84_v47 = vunpack.c.l.bf16 %v67_v34  ;;  %v85_v48 = vunpack.c.h.bf16 %v67_v34 }
  0x19   :  { %v1030_v49 = vadd.f32 %v136_v42, %v88_v37  ;;  %v1032_v50 = vadd.f32 %v137_v43, %v89_v38  ;;  %v132_v51 = vunpack.c.l.bf16 %v115_v39  ;;  %v133_v52 = vunpack.c.h.bf16 %v115_v39 }
  0x1a   :  { %725 = vst [vmem:[#allocation9] sm:$0xff] %v709_v41  ;;  %195 = vadd.xlane.f32.xlu0 %v194_v40  ;;  %v209_v55 = vadd.f32 %v1028_v46, %v1026_v45  ;;  %v714_v56 = vpack.c.bf16 %v1028_v46, %v1026_v45  ;;  %v98_v57 = vunpack.c.l.bf16 %v74_v44  ;;  %v99_v58 = vunpack.c.h.bf16 %v74_v44  ;;  %v128_v40 = vld [vmem:[#allocation5 + $0x70] sm:$0xff] }
  0x1b   :  { %v203_v60 = vadd.f32 %v1032_v50, %v1030_v49  ;;  %v712_v61 = vpack.c.bf16 %v1032_v50, %v1030_v49  ;;  %v1042_v62 = vadd.f32 %v132_v51, %v84_v47  ;;  %v1044_v63 = vadd.f32 %v133_v52, %v85_v48  ;;  %v76_v47 = vld [vmem:[#allocation2 + $0x50] sm:$0xff] }
  0x1c   :  { %730 = vst [vmem:[#allocation9 + $0x28] sm:$0xff] %v714_v56  ;;  %v146_v1 = vunpack.c.l.bf16 %v122_v53  ;;  %v147_v2 = vunpack.c.h.bf16 %v122_v53  ;;  %v94_v3 = vunpack.c.l.bf16 %v72_v54  ;;  %v95_v4 = vunpack.c.h.bf16 %v72_v54 }
  0x1d   :  { %728 = vst [vmem:[#allocation9 + $0x18] sm:$0xff] %v712_v61  ;;  %v197_v6 = vadd.f32 %v1044_v63, %v1042_v62  ;;  %v710_v7 = vpack.c.bf16 %v1044_v63, %v1042_v62  ;;  %v142_v8 = vunpack.c.l.bf16 %v120_v59  ;;  %v143_v9 = vunpack.c.h.bf16 %v120_v59  ;;  %v78_v59 = vld [vmem:[#allocation2 + $0x60] sm:$0xff] }
  0x1e   :  { %v1050_v11 = vadd.f32 %v146_v1, %v98_v57  ;;  %v1052_v12 = vadd.f32 %v147_v2, %v99_v58  ;;  %v104_v13 = vunpack.c.l.bf16 %v77_v0  ;;  %v105_v14 = vunpack.c.h.bf16 %v77_v0  ;;  %v124_v58 = vld [vmem:[#allocation5 + $0x50] sm:$0xff]  ;;  %v126_v2 = vld [vmem:[#allocation5 + $0x60] sm:$0xff] }
  0x1f   :  { %210 = vadd.xlane.f32.xlu2 %v209_v55  ;;  %204 = vadd.xlane.f32.xlu1 %v203_v60  ;;  %726 = vst [vmem:[#allocation9 + $0x8] sm:$0xff] %v710_v7  ;;  %v1054_v17 = vadd.f32 %v142_v8, %v94_v3  ;;  %v1056_v18 = vadd.f32 %v143_v9, %v95_v4  ;;  %v152_v21 = vunpack.c.l.bf16 %v125_v5  ;;  %v153_v22 = vunpack.c.h.bf16 %v125_v5 }
  0x20   :  { %v717_v25 = vpack.c.bf16 %v1052_v12, %v1050_v11  ;;  %v96_v26 = vunpack.c.l.bf16 %v73_v10  ;;  %v97_v27 = vunpack.c.h.bf16 %v73_v10  ;;  %v218_v29 = vadd.f32 %v1052_v12, %v1050_v11 }
  0x21   :  { %v715_v30 = vpack.c.bf16 %v1056_v18, %v1054_v17  ;;  %v1064_v31 = vadd.f32 %v152_v21, %v104_v13  ;;  %v1066_v34 = vadd.f32 %v153_v22, %v105_v14  ;;  %v144_v36 = vunpack.c.l.bf16 %v121_v23  ;;  %v127_v13 = vld [vmem:[#allocation5 + $0x68] sm:$0xff] }
  0x22   :  { %198 = vadd.xlane.f32.xlu0 %v197_v6  ;;  %733 = vst [vmem:[#allocation9 + $0x40] sm:$0xff] %v717_v25  ;;  %v145_v37 = vunpack.c.h.bf16 %v121_v23  ;;  %v100_v38 = vunpack.c.l.bf16 %v75_v24  ;;  %v101_v39 = vunpack.c.h.bf16 %v75_v24  ;;  %v212_v41 = vadd.f32 %v1056_v18, %v1054_v17  ;;  %v79_v6 = vld [vmem:[#allocation2 + $0x68] sm:$0xff]  ;;  %v81_v24 = vld [vmem:[#allocation2 + $0x78] sm:$0xff] }
  0x23   :  { %731 = vst [vmem:[#allocation9 + $0x30] sm:$0xff] %v715_v30  ;;  %v720_v42 = vpack.c.bf16 %v1066_v34, %v1064_v31  ;;  %v148_v43 = vunpack.c.l.bf16 %v123_v28  ;;  %v149_v44 = vunpack.c.h.bf16 %v123_v28  ;;  %v1072_v48 = vadd.f32 %v144_v36, %v96_v26 }
  0x24   :  { %v1074_v51 = vadd.f32 %v145_v37, %v97_v27  ;;  %v110_v52 = vunpack.c.l.bf16 %v80_v35  ;;  %v111_v53 = vunpack.c.h.bf16 %v80_v35  ;;  %v158_v56 = vunpack.c.l.bf16 %v128_v40  ;;  %v129_v37 = vld [vmem:[#allocation5 + $0x78] sm:$0xff] }
  0x25   :  { %736 = vst [vmem:[#allocation9 + $0x58] sm:$0xff] %v720_v42  ;;  %v1076_v54 = vadd.f32 %v148_v43, %v100_v38  ;;  %v1078_v55 = vadd.f32 %v149_v44, %v101_v39  ;;  %v159_v57 = vunpack.c.h.bf16 %v128_v40  ;;  %v102_v0 = vunpack.c.l.bf16 %v76_v47 }
  0x26   :  { %v215_v60 = vadd.f32 %v1074_v51, %v1072_v48  ;;  %v716_v61 = vpack.c.bf16 %v1074_v51, %v1072_v48  ;;  %v103_v1 = vunpack.c.h.bf16 %v76_v47  ;;  %v1086_v4 = vadd.f32 %v158_v56, %v110_v52 }
  0x27   :  { %219 = vadd.xlane.f32.xlu2 %v218_v29  ;;  %v718_v3 = vpack.c.bf16 %v1078_v55, %v1076_v54  ;;  %v1088_v5 = vadd.f32 %v159_v57, %v111_v53  ;;  %v150_v7 = vunpack.c.l.bf16 %v124_v58  ;;  %v151_v8 = vunpack.c.h.bf16 %v124_v58 }
  0x28   :  { %732 = vst [vmem:[#allocation9 + $0x38] sm:$0xff] %v716_v61  ;;  %216 = vadd.xlane.f32.xlu1 %v215_v60  ;;  %v106_v9 = vunpack.c.l.bf16 %v78_v59  ;;  %v107_v10 = vunpack.c.h.bf16 %v78_v59  ;;  %v227_v14 = vadd.f32 %v1066_v34, %v1064_v31  ;;  %v154_v22 = vunpack.c.l.bf16 %v126_v2 }
  0x29   :  { %734 = vst [vmem:[#allocation9 + $0x48] sm:$0xff] %v718_v3  ;;  %v723_v21 = vpack.c.bf16 %v1088_v5, %v1086_v4  ;;  %v155_v23 = vunpack.c.h.bf16 %v126_v2  ;;  %v1094_v25 = vadd.f32 %v150_v7, %v102_v0  ;;  %v1096_v26 = vadd.f32 %v151_v8, %v103_v1 }
  0x2a   :  { %213 = vadd.xlane.f32.xlu0 %v212_v41  ;;  %v108_v27 = vunpack.c.l.bf16 %v79_v6  ;;  %v109_v28 = vunpack.c.h.bf16 %v79_v6  ;;  %v1098_v29 = vadd.f32 %v154_v22, %v106_v9  ;;  %v156_v35 = vunpack.c.l.bf16 %v127_v13 }
  0x2b   :  { %739 = vst [vmem:[#allocation9 + $0x70] sm:$0xff] %v723_v21  ;;  %v1100_v30 = vadd.f32 %v155_v23, %v107_v10  ;;  %v157_v36 = vunpack.c.h.bf16 %v127_v13  ;;  %v224_v38 = vadd.f32 %v1096_v26, %v1094_v25  ;;  %v719_v39 = vpack.c.bf16 %v1096_v26, %v1094_v25 }
  0x2c   :  { %v112_v40 = vunpack.c.l.bf16 %v81_v24  ;;  %v113_v41 = vunpack.c.h.bf16 %v81_v24  ;;  %v221_v42 = vadd.f32 %v1078_v55, %v1076_v54  ;;  %v1110_v44 = vadd.f32 %v156_v35, %v108_v27 }
  0x2d   :  { %v721_v43 = vpack.c.bf16 %v1100_v30, %v1098_v29  ;;  %v1112_v47 = vadd.f32 %v157_v36, %v109_v28  ;;  %735 = vst [vmem:[#allocation9 + $0x50] sm:$0xff] %v719_v39  ;;  %v160_v52 = vunpack.c.l.bf16 %v129_v37  ;;  %v161_v53 = vunpack.c.h.bf16 %v129_v37 }
  0x2e   :  { %v236_v59 = vadd.f32 %v1088_v5, %v1086_v4  ;;  %v230_v0 = vadd.f32 %v1100_v30, %v1098_v29  ;;  %v954_v2 = vmov 256.0  }
  0x2f   :  { %228 = vadd.xlane.f32.xlu2 %v227_v14  ;;  %737 = vst [vmem:[#allocation9 + $0x60] sm:$0xff] %v721_v43  ;;  %v722_v56 = vpack.c.bf16 %v1112_v47, %v1110_v44  ;;  %v1116_v57 = vadd.f32 %v160_v52, %v112_v40  ;;  %v1118_v58 = vadd.f32 %v161_v53, %v113_v41  ;;  %787 = vrcp.f32 %v954_v2 }
  0x30   :  { %225 = vadd.xlane.f32.xlu1 %v224_v38  ;;  %v233_v61 = vadd.f32 %v1112_v47, %v1110_v44 }
  0x31   :  { %738 = vst [vmem:[#allocation9 + $0x68] sm:$0xff] %v722_v56  ;;  %v724_v60 = vpack.c.bf16 %v1118_v58, %v1116_v57  ;;  %v239_v1 = vadd.f32 %v1118_v58, %v1116_v57 }
  0x32   :  { %222 = vadd.xlane.f32.xlu0 %v221_v42 }
  0x33   :  { %740 = vst [vmem:[#allocation9 + $0x78] sm:$0xff] %v724_v60 }
  0x34   :  { %766 = dma.vmem_to_hbm [thread:$0]  %s759_s8, 2048, %s761_s11, [#allocation10], %s950_s26, %s950_s26, %s951_s27  }
  0x35   :  { %v788_v3 = vpop.eup %787 }
  0x36   :  { %v243_v6 = vmul.f32 256.0, %v788_v3  ;;  %vm247_vm0 = vweird.f32 %v788_v3 }
  0x37   :  { %237 = vadd.xlane.f32.xlu2 %v236_v59 }
  0x38   :  { %234 = vadd.xlane.f32.xlu1 %v233_v61  ;;  %v244_v7 = vsub.f32 1.0, %v243_v6 }
  0x3a   :  { %231 = vadd.xlane.f32.xlu0 %v230_v0  ;;  %v245_v8 = vmul.f32 %v788_v3, %v244_v7 }
  0x3c   :  { %v246_v9 = vadd.f32 %v788_v3, %v245_v8 }
  0x3e   :  { %v1130_v10 = vsel %vm247_vm0, %v788_v3, %v246_v9 }
  0x42   :  { %240 = vadd.xlane.f32.xlu0 %v239_v1 }
  0x8a   :  { %v208_v13 = vpop.xlane.xlu2 %207  ;;  %v202_v14 = vpop.xlane.xlu1 %201 }
  0x8b   :  { %v251_v21 = vmul.f32 %v1130_v10, %v202_v14  ;;  %v253_v60 = vmul.f32 %v1130_v10, %v208_v13 }
  0x8d   :  { %v196_v22 = vpop.xlane.xlu0 %195  ;;  %v1134_v23 = vsub.f32 %v1006_v19, %v251_v21  ;;  %v1137_v24 = vsub.f32 %v1008_v20, %v251_v21  ;;  %v1193_v8 = vsub.f32 %v1004_v16, %v253_v60 }
  0x8e   :  { %v249_v27 = vmul.f32 %v1130_v10, %v196_v22 }
  0x8f   :  { %v301_v36 = vmul.f32 %v1134_v23, %v1134_v23  ;;  %v302_v37 = vmul.f32 %v1137_v24, %v1137_v24 }
  0x90   :  { %v1141_v28 = vsub.f32 %v1018_v32, %v249_v27  ;;  %v1144_v35 = vsub.f32 %v1020_v33, %v249_v27 }
  0x91   :  { %v335_v19 = vadd.f32 %v302_v37, %v301_v36 }
  0x92   :  { %v211_v38 = vpop.xlane.xlu2 %210  ;;  %v297_v20 = vmul.f32 %v1141_v28, %v1141_v28  ;;  %v298_v39 = vmul.f32 %v1144_v35, %v1144_v35  ;;  %v205_v40 = vpop.xlane.xlu1 %204 }
  0x93   :  { %v254_v32 = vmul.f32 %v1130_v10, %v211_v38  ;;  %v252_v33 = vmul.f32 %v1130_v10, %v205_v40  ;;  %336 = vadd.xlane.f32.xlu0 %v335_v19  ;;  %v306_v38 = vmul.f32 %v1193_v8, %v1193_v8 }
  0x94   :  { %v329_v41 = vadd.f32 %v298_v39, %v297_v20 }
  0x95   :  { %v1157_v42 = vsub.f32 %v1026_v45, %v254_v32  ;;  %v1160_v43 = vsub.f32 %v1028_v46, %v254_v32  ;;  %v199_v52 = vpop.xlane.xlu0 %198  ;;  %v1163_v53 = vsub.f32 %v1030_v49, %v252_v33  ;;  %v1166_v56 = vsub.f32 %v1032_v50, %v252_v33 }
  0x96   :  { %v250_v59 = vmul.f32 %v1130_v10, %v199_v52  ;;  %330 = vadd.xlane.f32.xlu1 %v329_v41 }
  0x97   :  { %v307_v61 = vmul.f32 %v1157_v42, %v1157_v42  ;;  %v308_v45 = vmul.f32 %v1160_v43, %v1160_v43  ;;  %v303_v50 = vmul.f32 %v1163_v53, %v1163_v53  ;;  %v304_v0 = vmul.f32 %v1166_v56, %v1166_v56 }
  0x98   :  { %v1175_v46 = vsub.f32 %v1042_v62, %v250_v59  ;;  %v1178_v49 = vsub.f32 %v1044_v63, %v250_v59  ;;  %v1190_v63 = vsub.f32 %v1002_v15, %v253_v60 }
  0x99   :  { %v344_v1 = vadd.f32 %v308_v45, %v307_v61  ;;  %v338_v3 = vadd.f32 %v304_v0, %v303_v50 }
  0x9a   :  { %v220_v2 = vpop.xlane.xlu2 %219  ;;  %v299_v6 = vmul.f32 %v1175_v46, %v1175_v46  ;;  %v300_v7 = vmul.f32 %v1178_v49, %v1178_v49 }
  0x9b   :  { %v257_v62 = vmul.f32 %v1130_v10, %v220_v2  ;;  %345 = vadd.xlane.f32.xlu0 %v344_v1  ;;  %v217_v13 = vpop.xlane.xlu1 %216 }
  0x9c   :  { %v332_v9 = vadd.f32 %v300_v7, %v299_v6  ;;  %v256_v15 = vmul.f32 %v1130_v10, %v217_v13 }
  0x9d   :  { %v1196_v14 = vsub.f32 %v1050_v11, %v257_v62  ;;  %v1199_v21 = vsub.f32 %v1052_v12, %v257_v62  ;;  %v214_v22 = vpop.xlane.xlu0 %213  ;;  %v305_v12 = vmul.f32 %v1190_v63, %v1190_v63 }
  0x9e   :  { %v255_v27 = vmul.f32 %v1130_v10, %v214_v22  ;;  %339 = vadd.xlane.f32.xlu1 %v338_v3  ;;  %333 = vadd.xlane.f32.xlu2 %v332_v9  ;;  %v1218_v39 = vsub.f32 %v1072_v48, %v256_v15  ;;  %v1221_v32 = vsub.f32 %v1074_v51, %v256_v15 }
  0x9f   :  { %v313_v16 = vmul.f32 %v1196_v14, %v1196_v14  ;;  %v314_v36 = vmul.f32 %v1199_v21, %v1199_v21  ;;  %v341_v33 = vadd.f32 %v306_v38, %v305_v12 }
  0xa0   :  { %v1208_v37 = vsub.f32 %v1054_v17, %v255_v27  ;;  %v1211_v11 = vsub.f32 %v1056_v18, %v255_v27  ;;  %v311_v45 = vmul.f32 %v1218_v39, %v1218_v39  ;;  %v312_v50 = vmul.f32 %v1221_v32, %v1221_v32 }
  0xa1   :  { %v353_v19 = vadd.f32 %v314_v36, %v313_v16 }
  0xa2   :  { %v229_v20 = vpop.xlane.xlu2 %228  ;;  %v309_v17 = vmul.f32 %v1208_v37, %v1208_v37  ;;  %v310_v18 = vmul.f32 %v1211_v11, %v1211_v11  ;;  %v350_v62 = vadd.f32 %v312_v50, %v311_v45 }
  0xa3   :  { %v260_v40 = vmul.f32 %v1130_v10, %v229_v20  ;;  %354 = vadd.xlane.f32.xlu0 %v353_v19  ;;  %v226_v52 = vpop.xlane.xlu1 %225 }
  0xa4   :  { %v347_v41 = vadd.f32 %v310_v18, %v309_v17  ;;  %v259_v60 = vmul.f32 %v1130_v10, %v226_v52 }
  0xa5   :  { %v1229_v59 = vsub.f32 %v1064_v31, %v260_v40  ;;  %v1232_v48 = vsub.f32 %v1066_v34, %v260_v40  ;;  %v223_v51 = vpop.xlane.xlu0 %222 }
  0xa6   :  { %v258_v61 = vmul.f32 %v1130_v10, %v223_v51  ;;  %342 = vadd.xlane.f32.xlu2 %v341_v33  ;;  %348 = vadd.xlane.f32.xlu1 %v347_v41  ;;  %v1251_v2 = vsub.f32 %v1094_v25, %v259_v60  ;;  %v1254_v3 = vsub.f32 %v1096_v26, %v259_v60 }
  0xa7   :  { %v319_v31 = vmul.f32 %v1229_v59, %v1229_v59  ;;  %v320_v34 = vmul.f32 %v1232_v48, %v1232_v48 }
  0xa8   :  { %v1245_v0 = vsub.f32 %v1076_v54, %v258_v61  ;;  %v1248_v1 = vsub.f32 %v1078_v55, %v258_v61  ;;  %v317_v15 = vmul.f32 %v1251_v2, %v1251_v2  ;;  %v318_v16 = vmul.f32 %v1254_v3, %v1254_v3 }
  0xa9   :  { %v362_v6 = vadd.f32 %v320_v34, %v319_v31 }
  0xaa   :  { %v238_v7 = vpop.xlane.xlu2 %237  ;;  %v315_v9 = vmul.f32 %v1245_v0, %v1245_v0  ;;  %v316_v13 = vmul.f32 %v1248_v1, %v1248_v1  ;;  %v359_v17 = vadd.f32 %v318_v16, %v317_v15 }
  0xab   :  { %v263_v54 = vmul.f32 %v1130_v10, %v238_v7  ;;  %363 = vadd.xlane.f32.xlu0 %v362_v6  ;;  %v235_v22 = vpop.xlane.xlu1 %234 }
  0xac   :  { %v356_v55 = vadd.f32 %v316_v13, %v315_v9  ;;  %v262_v12 = vmul.f32 %v1130_v10, %v235_v22 }
  0xad   :  { %v1262_v25 = vsub.f32 %v1086_v4, %v263_v54  ;;  %v1265_v26 = vsub.f32 %v1088_v5, %v263_v54  ;;  %v232_v27 = vpop.xlane.xlu0 %231 }
  0xae   :  { %v261_v36 = vmul.f32 %v1130_v10, %v232_v27  ;;  %351 = vadd.xlane.f32.xlu2 %v350_v62  ;;  %357 = vadd.xlane.f32.xlu1 %v356_v55  ;;  %v1284_v18 = vsub.f32 %v1110_v44, %v262_v12  ;;  %v1287_v40 = vsub.f32 %v1112_v47, %v262_v12 }
  0xaf   :  { %v325_v4 = vmul.f32 %v1262_v25, %v1262_v25  ;;  %v326_v5 = vmul.f32 %v1265_v26, %v1265_v26 }
  0xb0   :  { %v1278_v38 = vsub.f32 %v1098_v29, %v261_v36  ;;  %v1281_v19 = vsub.f32 %v1100_v30, %v261_v36  ;;  %v323_v44 = vmul.f32 %v1284_v18, %v1284_v18  ;;  %v324_v47 = vmul.f32 %v1287_v40, %v1287_v40 }
  0xb1   :  { %v371_v20 = vadd.f32 %v326_v5, %v325_v4 }
  0xb2   :  { %v321_v33 = vmul.f32 %v1278_v38, %v1278_v38  ;;  %v322_v41 = vmul.f32 %v1281_v19, %v1281_v19  ;;  %v368_v61 = vadd.f32 %v324_v47, %v323_v44 }
  0xb3   :  { %372 = vadd.xlane.f32.xlu0 %v371_v20  ;;  %v601_v20 = vld [vmem:[#allocation7] sm:$0x3] }
  0xb4   :  { %v365_v29 = vadd.f32 %v322_v41, %v321_v33  ;;  %v1331_v44 = vperm.slane %v601_v20, 0  ;;  %v1333_v47 = vperm.slane %v601_v20, 1 }
  0xb5   :  { %v241_v52 = vpop.xlane.xlu0 %240 }
  0xb6   :  { %v264_v30 = vmul.f32 %v1130_v10, %v241_v52  ;;  %360 = vadd.xlane.f32.xlu2 %v359_v17  ;;  %366 = vadd.xlane.f32.xlu1 %v365_v29  ;;  %v639_v17 = vld [vmem:[%s1610_s3] sm:$0x3]  ;;  %s956_s3 = smov [#allocation8]  }
  0xb7   :  { %s745_s13 = sshll.u32 %s956_s3, 4  ;;  %s746_s13 = int_to_ptr.vmem [resolvable:$true] %s745_s13 }
  0xb8   :  { %v1299_v51 = vsub.f32 %v1116_v57, %v264_v30  ;;  %v1302_v60 = vsub.f32 %v1118_v58, %v264_v30 }
  0xba   :  { %v327_v45 = vmul.f32 %v1299_v51, %v1299_v51  ;;  %v328_v50 = vmul.f32 %v1302_v60, %v1302_v60 }
  0xbc   :  { %v374_v31 = vadd.f32 %v328_v50, %v327_v45  ;;  %v1338_v50 = vperm.slane %v639_v17, 1 }
  0xbe   :  { %369 = vadd.xlane.f32.xlu2 %v368_v61  ;;  %375 = vadd.xlane.f32.xlu1 %v374_v31  ;;  %v1335_v61 = vperm.slane %v639_v17, 0 }
 0x106   :  { %v337_v57 = vpop.xlane.xlu0 %336 }
 0x107   :  { %v379_v58 = vmul.f32 %v337_v57, %v1130_v10 }
 0x109   :  { %v331_v34 = vpop.xlane.xlu1 %330  ;;  %v395_v7 = vadd.f32 1e-05, %v379_v58 }
 0x10a   :  { %v377_v6 = vmul.f32 %v331_v34, %v1130_v10 }
 0x10b   :  { %789 = vrsqrt.f32 %v395_v7  ;;  %vm435_vm2 = vweird.f32 %v395_v7 }
 0x10c   :  { %v393_v62 = vadd.f32 1e-05, %v377_v6 }
 0x10e   :  { %791 = vrsqrt.f32 %v393_v62  ;;  %v346_v9 = vpop.xlane.xlu0 %345  ;;  %vm415_vm4 = vweird.f32 %v393_v62 }
 0x10f   :  { %v382_v13 = vmul.f32 %v346_v9, %v1130_v10 }
 0x111   :  { %v340_v54 = vpop.xlane.xlu1 %339  ;;  %v334_v55 = vpop.xlane.xlu2 %333  ;;  %v1319_v16 = vadd.f32 1e-05, %v382_v13 }
 0x112   :  { %v790_v22 = vpop.eup %789  ;;  %v380_v27 = vmul.f32 %v340_v54, %v1130_v10  ;;  %v378_v15 = vmul.f32 %v334_v55, %v1130_v10 }
 0x113   :  { %v430_v36 = vmul.f32 %v790_v22, %v395_v7  ;;  %793 = vrsqrt.f32 %v1319_v16  ;;  %vm436_vm1 = vweird.f32 %v790_v22  ;;  %vm465_vm6 = vweird.f32 %v1319_v16 }
 0x114   :  { %v792_v12 = vpop.eup %791  ;;  %v1321_v4 = vadd.f32 1e-05, %v380_v27  ;;  %v1323_v5 = vadd.f32 1e-05, %v378_v15  ;;  %vm437_vm5 = vmor %vm435_vm2, %vm436_vm1 }
 0x115   :  { %v410_v33 = vmul.f32 %v792_v12, %v393_v62  ;;  %v431_v41 = vmul.f32 %v790_v22, %v430_v36  ;;  %vm416_vm3 = vweird.f32 %v792_v12 }
 0x116   :  { %795 = vrsqrt.f32 %v1321_v4  ;;  %v355_v30 = vpop.xlane.xlu0 %354  ;;  %vm445_vm7 = vweird.f32 %v1321_v4  ;;  %vm417_vm9 = vmor %vm415_vm4, %vm416_vm3  ;;  %vm425_vm14 = vweird.f32 %v1323_v5 }
 0x117   :  { %v411_v29 = vmul.f32 %v792_v12, %v410_v33  ;;  %v432_v52 = vmul.f32 0.5, %v431_v41  ;;  %797 = vrsqrt.f32 %v1323_v5  ;;  %v385_v45 = vmul.f32 %v355_v30, %v1130_v10 }
 0x119   :  { %v412_v31 = vmul.f32 0.5, %v411_v29  ;;  %v433_v57 = vsub.f32 1.5, %v432_v52  ;;  %v343_v58 = vpop.xlane.xlu2 %342  ;;  %v349_v34 = vpop.xlane.xlu1 %348  ;;  %v1344_v54 = vadd.f32 1e-05, %v385_v45 }
 0x11a   :  { %v1340_v6 = vpop.eup %793  ;;  %v381_v9 = vmul.f32 %v343_v58, %v1130_v10  ;;  %v383_v13 = vmul.f32 %v349_v34, %v1130_v10 }
 0x11b   :  { %v413_v55 = vsub.f32 1.5, %v412_v31  ;;  %v434_v27 = vmul.f32 %v790_v22, %v433_v57  ;;  %v460_v15 = vmul.f32 %v1340_v6, %v1319_v16  ;;  %799 = vrsqrt.f32 %v1344_v54 }
 0x11c   :  { %v796_v36 = vpop.eup %795  ;;  %v1349_v20 = vadd.f32 1e-05, %v381_v9  ;;  %vm466_vm8 = vweird.f32 %v1340_v6  ;;  %v1362_v30 = vadd.f32 1e-05, %v383_v13  ;;  %vm495_vm1 = vweird.f32 %v1344_v54 }
 0x11d   :  { %v1352_v7 = vpop.eup %797  ;;  %v414_v17 = vmul.f32 %v792_v12, %v413_v55  ;;  %v438_v33 = vsel %vm437_vm5, %v790_v22, %v434_v27  ;;  %v440_v41 = vmul.f32 %v796_v36, %v1321_v4  ;;  %v461_v22 = vmul.f32 %v1340_v6, %v460_v15  ;;  %vm467_vm12 = vmor %vm465_vm6, %vm466_vm8 }
 0x11e   :  { %v573_v62 = vmul.f32 %v438_v33, %v1134_v23  ;;  %v574_v29 = vmul.f32 %v438_v33, %v1137_v24  ;;  %v420_v52 = vmul.f32 %v1352_v7, %v1323_v5  ;;  %801 = vrsqrt.f32 %v1349_v20 }
 0x11f   :  { %v418_v45 = vsel %vm417_vm9, %v792_v12, %v414_v17  ;;  %v441_v31 = vmul.f32 %v796_v36, %v440_v41  ;;  %vm446_vm10 = vweird.f32 %v796_v36  ;;  %v462_v13 = vmul.f32 0.5, %v461_v22 }
 0x120   :  { %v569_v57 = vmul.f32 %v418_v45, %v1141_v28  ;;  %v570_v58 = vmul.f32 %v418_v45, %v1144_v35  ;;  %v611_v34 = vmul.f32 %v1331_v44, %v573_v62  ;;  %v612_v23 = vmul.f32 %v1333_v47, %v574_v29  ;;  %vm447_vm13 = vmor %vm445_vm7, %vm446_vm10 }
 0x121   :  { %v442_v24 = vmul.f32 0.5, %v441_v31  ;;  %v421_v9 = vmul.f32 %v1352_v7, %v420_v52  ;;  %v1371_v55 = vpop.eup %799  ;;  %v463_v33 = vsub.f32 1.5, %v462_v13  ;;  %803 = vrsqrt.f32 %v1362_v30 }
 0x122   :  { %v607_v12 = vmul.f32 %v1331_v44, %v569_v57  ;;  %v608_v27 = vmul.f32 %v1333_v47, %v570_v58  ;;  %v649_v15 = vadd.f32 %v1335_v61, %v611_v34  ;;  %v650_v28 = vadd.f32 %v1338_v50, %v612_v23  ;;  %v352_v58 = vpop.xlane.xlu2 %351 }
 0x123   :  { %v443_v35 = vsub.f32 1.5, %v442_v24  ;;  %v422_v17 = vmul.f32 0.5, %v421_v9  ;;  %vm426_vm11 = vweird.f32 %v1352_v7  ;;  %v464_v22 = vmul.f32 %v1340_v6, %v463_v33 }
 0x124   :  { %v645_v41 = vadd.f32 %v1335_v61, %v607_v12  ;;  %v646_v62 = vadd.f32 %v1338_v50, %v608_v27  ;;  %v679_v29 = vpack.c.bf16 %v650_v28, %v649_v15  ;;  %v1381_v52 = vpop.eup %801  ;;  %v490_v57 = vmul.f32 %v1371_v55, %v1344_v54  ;;  %vm427_vm2 = vmor %vm425_vm14, %vm426_vm11  ;;  %v358_v27 = vpop.xlane.xlu1 %357 }
 0x125   :  { %v444_v45 = vmul.f32 %v796_v36, %v443_v35  ;;  %v423_v31 = vsub.f32 1.5, %v422_v17  ;;  %v450_v23 = vmul.f32 %v1381_v52, %v1349_v20  ;;  %vm456_vm15 = vweird.f32 %v1381_v52 }
 0x126   :  { %v677_v34 = vpack.c.bf16 %v646_v62, %v645_v41  ;;  %695 = vst [vmem:[#allocation8 + $0x10] sm:$0xff] %v679_v29  ;;  %v468_v9 = vsel %vm467_vm12, %v1340_v6, %v464_v22  ;;  %vm455_vm0 = vweird.f32 %v1349_v20  ;;  %v491_v13 = vmul.f32 %v1371_v55, %v490_v57 }
 0x127   :  { %v448_v24 = vsel %vm447_vm13, %v796_v36, %v444_v45  ;;  %v424_v16 = vmul.f32 %v1352_v7, %v423_v31  ;;  %v579_v36 = vmul.f32 %v468_v9, %v1157_v42  ;;  %v580_v12 = vmul.f32 %v468_v9, %v1160_v43  ;;  %v804_v6 = vpop.eup %803  ;;  %vm457_vm5 = vmor %vm455_vm0, %vm456_vm15 }
 0x128   :  { %693 = vst [vmem:[#allocation8] sm:$0xff] %v677_v34  ;;  %v575_v4 = vmul.f32 %v448_v24, %v1163_v53  ;;  %v576_v5 = vmul.f32 %v448_v24, %v1166_v56  ;;  %v451_v28 = vmul.f32 %v1381_v52, %v450_v23  ;;  %v492_v35 = vmul.f32 0.5, %v491_v13  ;;  %v364_v34 = vpop.xlane.xlu0 %363 }
 0x129   :  { %v428_v15 = vsel %vm427_vm2, %v1352_v7, %v424_v16  ;;  %v384_v17 = vmul.f32 %v352_v58, %v1130_v10  ;;  %v617_v42 = vmul.f32 %v1331_v44, %v579_v36  ;;  %v618_v43 = vmul.f32 %v1333_v47, %v580_v12 }
 0x12a   :  { %v613_v53 = vmul.f32 %v1331_v44, %v575_v4  ;;  %v614_v56 = vmul.f32 %v1333_v47, %v576_v5  ;;  %v571_v33 = vmul.f32 %v428_v15, %v1175_v46  ;;  %v572_v41 = vmul.f32 %v428_v15, %v1178_v49  ;;  %v361_v36 = vpop.xlane.xlu2 %360 }
 0x12b   :  { %v452_v62 = vmul.f32 0.5, %v451_v28  ;;  %v470_v7 = vmul.f32 %v804_v6, %v1362_v30  ;;  %vm475_vm3 = vweird.f32 %v1362_v30  ;;  %v655_v46 = vadd.f32 %v1335_v61, %v617_v42 }
 0x12c   :  { %v651_v29 = vadd.f32 %v1335_v61, %v613_v53  ;;  %v652_v45 = vadd.f32 %v1338_v50, %v614_v56  ;;  %v609_v31 = vmul.f32 %v1331_v44, %v571_v33  ;;  %v610_v22 = vmul.f32 %v1333_v47, %v572_v41 }
 0x12d   :  { %v656_v49 = vadd.f32 %v1338_v50, %v618_v43  ;;  %v453_v57 = vsub.f32 1.5, %v452_v62  ;;  %v471_v58 = vmul.f32 %v804_v6, %v470_v7  ;;  %vm496_vm4 = vweird.f32 %v1371_v55 }
 0x12e   :  { %v680_v23 = vpack.c.bf16 %v652_v45, %v651_v29  ;;  %v647_v24 = vadd.f32 %v1335_v61, %v609_v31  ;;  %v648_v16 = vadd.f32 %v1338_v50, %v610_v22  ;;  %v493_v5 = vsub.f32 1.5, %v492_v35  ;;  %vm497_vm7 = vmor %vm495_vm1, %vm496_vm4 }
 0x12f   :  { %v682_v9 = vpack.c.bf16 %v656_v49, %v655_v46  ;;  %v454_v13 = vmul.f32 %v1381_v52, %v453_v57  ;;  %v472_v4 = vmul.f32 0.5, %v471_v58  ;;  %v1433_v15 = vadd.f32 1e-05, %v384_v17 }
 0x130   :  { %696 = vst [vmem:[#allocation8 + $0x18] sm:$0xff] %v680_v23  ;;  %v678_v12 = vpack.c.bf16 %v648_v16, %v647_v24  ;;  %v386_v28 = vmul.f32 %v358_v27, %v1130_v10  ;;  %v388_v53 = vmul.f32 %v364_v34, %v1130_v10  ;;  %vm476_vm6 = vweird.f32 %v804_v6  ;;  %v367_v27 = vpop.xlane.xlu1 %366  ;;  %v373_v34 = vpop.xlane.xlu0 %372 }
 0x131   :  { %698 = vst [vmem:[#allocation8 + $0x28] sm:$0xff] %v682_v9  ;;  %v458_v56 = vsel %vm457_vm5, %v1381_v52, %v454_v13  ;;  %v473_v33 = vsub.f32 1.5, %v472_v4  ;;  %v494_v35 = vmul.f32 %v1371_v55, %v493_v5  ;;  %805 = vrsqrt.f32 %v1433_v15  ;;  %vm477_vm8 = vmor %vm475_vm3, %vm476_vm6 }
 0x132   :  { %694 = vst [vmem:[#allocation8 + $0x8] sm:$0xff] %v678_v12  ;;  %v577_v41 = vmul.f32 %v458_v56, %v1190_v63  ;;  %v578_v42 = vmul.f32 %v458_v56, %v1193_v8  ;;  %v387_v20 = vmul.f32 %v361_v36, %v1130_v10  ;;  %v1448_v43 = vadd.f32 1e-05, %v386_v28  ;;  %v370_v24 = vpop.xlane.xlu2 %369 }
 0x133   :  { %v474_v52 = vmul.f32 %v804_v6, %v473_v33  ;;  %v498_v17 = vsel %vm497_vm7, %v1371_v55, %v494_v35  ;;  %v1450_v62 = vadd.f32 1e-05, %v388_v53  ;;  %v389_v58 = vmul.f32 %v367_v27, %v1130_v10 }
 0x134   :  { %v615_v63 = vmul.f32 %v1331_v44, %v577_v41  ;;  %v616_v8 = vmul.f32 %v1333_v47, %v578_v42  ;;  %v585_v54 = vmul.f32 %v498_v17, %v1196_v14  ;;  %v586_v7 = vmul.f32 %v498_v17, %v1199_v21 }
 0x135   :  { %v478_v29 = vsel %vm477_vm8, %v804_v6, %v474_v52  ;;  %807 = vrsqrt.f32 %v1448_v43  ;;  %v1467_v14 = vadd.f32 1e-05, %v387_v20  ;;  %v1478_v36 = vadd.f32 1e-05, %v389_v58 }
 0x136   :  { %v653_v55 = vadd.f32 %v1335_v61, %v615_v63  ;;  %v654_v45 = vadd.f32 %v1338_v50, %v616_v8  ;;  %v581_v31 = vmul.f32 %v478_v29, %v1208_v37  ;;  %v582_v22 = vmul.f32 %v478_v29, %v1211_v11 }
 0x137   :  { %v623_v46 = vmul.f32 %v1331_v44, %v585_v54  ;;  %v624_v30 = vmul.f32 %v1333_v47, %v586_v7  ;;  %809 = vrsqrt.f32 %v1450_v62  ;;  %v806_v21 = vpop.eup %805  ;;  %v391_v12 = vmul.f32 %v373_v34, %v1130_v10 }
 0x138   :  { %v681_v6 = vpack.c.bf16 %v654_v45, %v653_v55  ;;  %v619_v49 = vmul.f32 %v1331_v44, %v581_v31  ;;  %v620_v57 = vmul.f32 %v1333_v47, %v582_v22  ;;  %v480_v23 = vmul.f32 %v806_v21, %v1433_v15  ;;  %v376_v33 = vpop.xlane.xlu1 %375 }
 0x139   :  { %v661_v37 = vadd.f32 %v1335_v61, %v623_v46  ;;  %v662_v11 = vadd.f32 %v1338_v50, %v624_v30  ;;  %811 = vrsqrt.f32 %v1467_v14  ;;  %v390_v56 = vmul.f32 %v370_v24, %v1130_v10 }
 0x13a   :  { %697 = vst [vmem:[#allocation8 + $0x20] sm:$0xff] %v681_v6  ;;  %v657_v16 = vadd.f32 %v1335_v61, %v619_v49  ;;  %v658_v9 = vadd.f32 %v1338_v50, %v620_v57  ;;  %v481_v5 = vmul.f32 %v806_v21, %v480_v23  ;;  %813 = vrsqrt.f32 %v1478_v36 }
 0x13b   :  { %v808_v13 = vpop.eup %807  ;;  %v685_v4 = vpack.c.bf16 %v662_v11, %v661_v37  ;;  %v1484_v42 = vadd.f32 1e-05, %v391_v12  ;;  %vm486_vm9 = vweird.f32 %v806_v21  ;;  %v1488_v17 = vadd.f32 1e-05, %v390_v56 }
 0x13c   :  { %v683_v28 = vpack.c.bf16 %v658_v9, %v657_v16  ;;  %v500_v53 = vmul.f32 %v808_v13, %v1448_v43  ;;  %v482_v41 = vmul.f32 0.5, %v481_v5  ;;  %v392_v63 = vmul.f32 %v376_v33, %v1130_v10 }
 0x13d   :  { %v810_v35 = vpop.eup %809  ;;  %701 = vst [vmem:[#allocation8 + $0x40] sm:$0xff] %v685_v4  ;;  %815 = vrsqrt.f32 %v1484_v42  ;;  %vm485_vm10 = vweird.f32 %v1433_v15  ;;  %vm505_vm11 = vweird.f32 %v1448_v43  ;;  %vm525_vm12 = vweird.f32 %v1450_v62 }
 0x13e   :  { %699 = vst [vmem:[#allocation8 + $0x30] sm:$0xff] %v683_v28  ;;  %v501_v20 = vmul.f32 %v808_v13, %v500_v53  ;;  %v520_v27 = vmul.f32 %v810_v35, %v1450_v62  ;;  %v483_v52 = vsub.f32 1.5, %v482_v41  ;;  %v1495_v45 = vadd.f32 1e-05, %v392_v63  ;;  %vm487_vm13 = vmor %vm485_vm10, %vm486_vm9 }
 0x13f   :  { %v812_v8 = vpop.eup %811  ;;  %vm506_vm14 = vweird.f32 %v808_v13  ;;  %vm526_vm15 = vweird.f32 %v810_v35  ;;  %vm515_vm0 = vweird.f32 %v1467_v14  ;;  %817 = vrsqrt.f32 %v1488_v17 }
 0x140   :  { %v502_v54 = vmul.f32 0.5, %v501_v20  ;;  %v521_v7 = vmul.f32 %v810_v35, %v520_v27  ;;  %v484_v29 = vmul.f32 %v806_v21, %v483_v52  ;;  %v510_v55 = vmul.f32 %v812_v8, %v1467_v14  ;;  %v1499_v10 = vpop.eup %813  ;;  %vm507_vm2 = vmor %vm505_vm11, %vm506_vm14 }
 0x141   :  { %vm516_vm1 = vweird.f32 %v812_v8  ;;  %v530_v37 = vmul.f32 %v1499_v10, %v1478_v36  ;;  %vm536_vm3 = vweird.f32 %v1499_v10  ;;  %819 = vrsqrt.f32 %v1495_v45  ;;  %vm527_vm6 = vmor %vm525_vm12, %vm526_vm15 }
 0x142   :  { %v503_v31 = vsub.f32 1.5, %v502_v54  ;;  %v522_v22 = vmul.f32 0.5, %v521_v7  ;;  %v488_v15 = vsel %vm487_vm13, %v806_v21, %v484_v29  ;;  %v511_v46 = vmul.f32 %v812_v8, %v510_v55  ;;  %vm517_vm7 = vmor %vm515_vm0, %vm516_vm1 }
 0x143   :  { %v583_v30 = vmul.f32 %v488_v15, %v1218_v39  ;;  %v584_v6 = vmul.f32 %v488_v15, %v1221_v32  ;;  %v1504_v58 = vpop.eup %815  ;;  %vm535_vm4 = vweird.f32 %v1478_v36  ;;  %vm555_vm5 = vweird.f32 %v1484_v42 }
 0x144   :  { %v504_v49 = vmul.f32 %v808_v13, %v503_v31  ;;  %v523_v57 = vsub.f32 1.5, %v522_v22  ;;  %v512_v34 = vmul.f32 0.5, %v511_v46  ;;  %v531_v16 = vmul.f32 %v1499_v10, %v530_v37  ;;  %vm537_vm9 = vmor %vm535_vm4, %vm536_vm3 }
 0x145   :  { %v621_v21 = vmul.f32 %v1331_v44, %v583_v30  ;;  %v622_v39 = vmul.f32 %v1333_v47, %v584_v6  ;;  %v550_v5 = vmul.f32 %v1504_v58, %v1484_v42  ;;  %v1526_v12 = vpop.eup %817  ;;  %vm556_vm8 = vweird.f32 %v1504_v58 }
 0x146   :  { %v508_v32 = vsel %vm507_vm2, %v808_v13, %v504_v49  ;;  %v524_v11 = vmul.f32 %v810_v35, %v523_v57  ;;  %v513_v24 = vsub.f32 1.5, %v512_v34  ;;  %v532_v33 = vmul.f32 0.5, %v531_v16  ;;  %vm557_vm10 = vmor %vm555_vm5, %vm556_vm8 }
 0x147   :  { %v587_v43 = vmul.f32 %v508_v32, %v1245_v0  ;;  %v588_v23 = vmul.f32 %v508_v32, %v1248_v1  ;;  %v659_v9 = vadd.f32 %v1335_v61, %v621_v21  ;;  %v660_v13 = vadd.f32 %v1338_v50, %v622_v39  ;;  %v1533_v20 = vpop.eup %819 }
 0x148   :  { %v528_v4 = vsel %vm527_vm6, %v810_v35, %v524_v11  ;;  %v514_v56 = vmul.f32 %v812_v8, %v513_v24  ;;  %v551_v41 = vmul.f32 %v1504_v58, %v550_v5  ;;  %v540_v14 = vmul.f32 %v1526_v12, %v1488_v17 }
 0x149   :  { %v625_v0 = vmul.f32 %v1331_v44, %v587_v43  ;;  %v626_v1 = vmul.f32 %v1333_v47, %v588_v23  ;;  %v591_v62 = vmul.f32 %v528_v4, %v1229_v59  ;;  %v592_v28 = vmul.f32 %v528_v4, %v1232_v48 }
 0x14a   :  { %v684_v53 = vpack.c.bf16 %v660_v13, %v659_v9  ;;  %v518_v59 = vsel %vm517_vm7, %v812_v8, %v514_v56  ;;  %v533_v48 = vsub.f32 1.5, %v532_v33  ;;  %v552_v54 = vmul.f32 0.5, %v551_v41 }
 0x14b   :  { %v663_v35 = vadd.f32 %v1335_v61, %v625_v0  ;;  %v664_v27 = vadd.f32 %v1338_v50, %v626_v1  ;;  %v629_v52 = vmul.f32 %v1331_v44, %v591_v62  ;;  %v630_v63 = vmul.f32 %v1333_v47, %v592_v28 }
 0x14c   :  { %700 = vst [vmem:[#allocation8 + $0x38] sm:$0xff] %v684_v53  ;;  %v589_v31 = vmul.f32 %v518_v59, %v1251_v2  ;;  %v590_v22 = vmul.f32 %v518_v59, %v1254_v3  ;;  %v534_v15 = vmul.f32 %v1499_v10, %v533_v48  ;;  %v553_v46 = vsub.f32 1.5, %v552_v54 }
 0x14d   :  { %v686_v7 = vpack.c.bf16 %v664_v27, %v663_v35  ;;  %v667_v29 = vadd.f32 %v1335_v61, %v629_v52  ;;  %v668_v55 = vadd.f32 %v1338_v50, %v630_v63  ;;  %v560_v2 = vmul.f32 %v1533_v20, %v1495_v45 }
 0x14e   :  { %v627_v30 = vmul.f32 %v1331_v44, %v589_v31  ;;  %v628_v3 = vmul.f32 %v1333_v47, %v590_v22  ;;  %v538_v6 = vsel %vm537_vm9, %v1499_v10, %v534_v15  ;;  %v554_v49 = vmul.f32 %v1504_v58, %v553_v46 }
 0x14f   :  { %702 = vst [vmem:[#allocation8 + $0x48] sm:$0xff] %v686_v7  ;;  %v688_v8 = vpack.c.bf16 %v668_v55, %v667_v29  ;;  %v541_v57 = vmul.f32 %v1526_v12, %v540_v14  ;;  %v593_v37 = vmul.f32 %v538_v6, %v1278_v38  ;;  %v594_v21 = vmul.f32 %v538_v6, %v1281_v19 }
 0x150   :  { %v665_v34 = vadd.f32 %v1335_v61, %v627_v30  ;;  %v561_v36 = vmul.f32 %v1533_v20, %v560_v2  ;;  %v666_v10 = vadd.f32 %v1338_v50, %v628_v3  ;;  %v558_v39 = vsel %vm557_vm10, %v1504_v58, %v554_v49 }
 0x151   :  { %704 = vst [vmem:[#allocation8 + $0x58] sm:$0xff] %v688_v8  ;;  %v542_v32 = vmul.f32 0.5, %v541_v57  ;;  %v631_v11 = vmul.f32 %v1331_v44, %v593_v37  ;;  %v632_v43 = vmul.f32 %v1333_v47, %v594_v21  ;;  %v597_v38 = vmul.f32 %v558_v39, %v1262_v25 }
 0x152   :  { %v598_v19 = vmul.f32 %v558_v39, %v1265_v26  ;;  %v687_v23 = vpack.c.bf16 %v666_v10, %v665_v34  ;;  %vm546_vm11 = vweird.f32 %v1526_v12  ;;  %v562_v42 = vmul.f32 0.5, %v561_v36 }
 0x153   :  { %v543_v24 = vsub.f32 1.5, %v542_v32  ;;  %v669_v16 = vadd.f32 %v1335_v61, %v631_v11  ;;  %v670_v9 = vadd.f32 %v1338_v50, %v632_v43  ;;  %v635_v58 = vmul.f32 %v1331_v44, %v597_v38 }
 0x154   :  { %v636_v13 = vmul.f32 %v1333_v47, %v598_v19  ;;  %703 = vst [vmem:[#allocation8 + $0x50] sm:$0xff] %v687_v23  ;;  %vm545_vm12 = vweird.f32 %v1488_v17  ;;  %v563_v25 = vsub.f32 1.5, %v562_v42  ;;  %vm566_vm13 = vweird.f32 %v1533_v20 }
 0x155   :  { %v544_v4 = vmul.f32 %v1526_v12, %v543_v24  ;;  %v689_v26 = vpack.c.bf16 %v670_v9, %v669_v16  ;;  %v673_v5 = vadd.f32 %v1335_v61, %v635_v58  ;;  %vm547_vm14 = vmor %vm545_vm12, %vm546_vm11  ;;  %vm565_vm15 = vweird.f32 %v1495_v45 }
 0x156   :  { %v674_v0 = vadd.f32 %v1338_v50, %v636_v13  ;;  %v564_v62 = vmul.f32 %v1533_v20, %v563_v25  ;;  %vm567_vm0 = vmor %vm565_vm15, %vm566_vm13 }
 0x157   :  { %v548_v1 = vsel %vm547_vm14, %v1526_v12, %v544_v4  ;;  %705 = vst [vmem:[#allocation8 + $0x60] sm:$0xff] %v689_v26 }
 0x158   :  { %v691_v28 = vpack.c.bf16 %v674_v0, %v673_v5  ;;  %v595_v53 = vmul.f32 %v548_v1, %v1284_v18  ;;  %v596_v17 = vmul.f32 %v548_v1, %v1287_v40  ;;  %v568_v56 = vsel %vm567_vm0, %v1533_v20, %v564_v62 }
 0x159   :  { %v599_v12 = vmul.f32 %v568_v56, %v1299_v51  ;;  %v600_v35 = vmul.f32 %v568_v56, %v1302_v60 }
 0x15a   :  { %707 = vst [vmem:[#allocation8 + $0x70] sm:$0xff] %v691_v28  ;;  %v633_v33 = vmul.f32 %v1331_v44, %v595_v53  ;;  %v634_v41 = vmul.f32 %v1333_v47, %v596_v17 }
 0x15b   :  { %v637_v18 = vmul.f32 %v1331_v44, %v599_v12  ;;  %v638_v40 = vmul.f32 %v1333_v47, %v600_v35 }
 0x15c   :  { %v671_v45 = vadd.f32 %v1335_v61, %v633_v33  ;;  %v672_v27 = vadd.f32 %v1338_v50, %v634_v41 }
 0x15d   :  { %v675_v52 = vadd.f32 %v1335_v61, %v637_v18  ;;  %v676_v51 = vadd.f32 %v1338_v50, %v638_v40 }
 0x15e   :  { %v690_v20 = vpack.c.bf16 %v672_v27, %v671_v45 }
 0x15f   :  { %v692_v60 = vpack.c.bf16 %v676_v51, %v675_v52 }
 0x160   :  { %706 = vst [vmem:[#allocation8 + $0x68] sm:$0xff] %v690_v20 }
 0x161   :  { %708 = vst [vmem:[#allocation8 + $0x78] sm:$0xff] %v692_v60 }
 0x162   :  { %753 = dma.vmem_to_hbm [thread:$0]  %s746_s13, 2048, %s748_s16, [#allocation4], %s950_s26, %s950_s26, %s951_s27  }
 0x163   :  { %945 = dma.done.wait [#allocation4], 2048  }
 0x164   :  { %946 = vsyncadd [#allocation4], 4294965248 }
 0x165   :  { %947 = dma.done.wait [#allocation10], 2048  }
 0x166   :  { %948 = vsyncadd [#allocation10], 4294965248 }
 0x167   :  { %775 = vsyncpa [#allocation3], 1 }
 0x168   :  { %776 = vsyncpa [#allocation6], 1 }
 0x169   :  { %777 = vsyncpa [#allocation4], 1 }
 0x16a   :  { %778 = vsyncpa [#allocation10], 1 }

</bundles_post_ra>
